<compile_context>
chip_gen: v5e
topology: v5e:2x2
jax: 0.10.0
libtpu: 0.0.40
codegen_flags: <defaults>
</compile_context>

<pallas_src>
import functools

import jax
import jax.numpy as jnp
from jax.experimental import pallas as pl
from jax.experimental.pallas import tpu as pltpu


def _round_up(x, m):
    return ((x + m - 1) // m) * m


# ----------------------------------------------------------------------------
# Fused IGM forward kernel
# ----------------------------------------------------------------------------
def _igm_fused_kernel(x_ref, row_ref, col_ref, batch_ref, u1_ref, u2_ref, *rest,
                      num_enc, num_cls, eps, inv_temp, mxu_dtype):
    # ---- unpack remaining refs (inputs then outputs) ----
    pos = 0

    def take(n):
        nonlocal pos
        chunk = rest[pos:pos + n]
        pos += n
        return chunk

    enc_params = [take(2) for _ in range(num_enc)]
    w1aT_ref, w1bT_ref, b1_ref, w2T_ref, b2_ref = take(5)
    cls_params = [take(2) for _ in range(num_cls)]
    head_w_ref, head_b_ref = take(2)
    pred_ref, ew_ref = take(2)

    n_nodes = x_ref.shape[0]
    n_edges = row_ref.shape[1]
    n_graphs = pred_ref.shape[0]

    x = x_ref[...]                                           # (N, Din) f32

    # ---- edge one-hot selection matrices, built in-kernel (already bf16) ----
    iota_ne = jax.lax.broadcasted_iota(jnp.int32, (n_nodes, n_edges), 0)
    s_src = (iota_ne == row_ref[...]).astype(mxu_dtype)      # (N, E) src one-hot
    s_dst = (iota_ne == col_ref[...]).astype(mxu_dtype)      # (N, E) dst one-hot

    # dense adjacency: A[i, j] = #edges j -> i   (== zeros.at[col, row].add(1))
    a = jax.lax.dot_general(
        s_dst, s_src, (((1,), (1,)), ((), ())),
        preferred_element_type=jnp.float32).astype(mxu_dtype)  # (N, N)

    def gin_stack(h0, params):
        h = h0
        for w_ref, b_ref in params:
            h_mx = h.astype(mxu_dtype)
            agg = jnp.dot(a, h_mx, preferred_element_type=jnp.float32)
            z = (1.0 + eps) * h + agg
            y = jnp.dot(z.astype(mxu_dtype), w_ref[...].astype(mxu_dtype),
                        preferred_element_type=jnp.float32) + b_ref[...]
            h = jnp.maximum(y, 0.0)
        return h

    # ---- gnn_encoder ----
    h = gin_stack(x, enc_params)                             # (N, emb) f32

    # ---- edge attention + concrete sample, feature-major (lanes = edges) ----
    ht = h.T.astype(mxu_dtype)                               # (emb, N)
    h_srcT = jnp.dot(ht, s_src, preferred_element_type=jnp.float32)  # (emb, E)
    h_dstT = jnp.dot(ht, s_dst, preferred_element_type=jnp.float32)  # (emb, E)
    hidT = (jnp.dot(w1aT_ref[...].astype(mxu_dtype), h_srcT.astype(mxu_dtype),
                    preferred_element_type=jnp.float32)
            + jnp.dot(w1bT_ref[...].astype(mxu_dtype), h_dstT.astype(mxu_dtype),
                      preferred_element_type=jnp.float32)
            + b1_ref[...])                                   # (4*emb, E)
    hidT = jnp.maximum(hidT, 0.0)
    logit = jnp.dot(w2T_ref[...].astype(mxu_dtype), hidT.astype(mxu_dtype),
                    preferred_element_type=jnp.float32) + b2_ref[...]  # (1, E)

    # concrete_sample(sigmoid(logit), temp, training=True):
    #   exp(p1)/(exp(p1)+exp(p2)) == sigmoid((logit + g1 - g2)/temp)
    g1 = -jnp.log(-jnp.log(u1_ref[...]))
    g2 = -jnp.log(-jnp.log(u2_ref[...]))
    ew_ref[...] = jax.nn.sigmoid((logit + g1 - g2) * inv_temp)  # (1, E) lane-dense

    # ---- classifier GNN on the raw batch (c_in='raw') + mean pool + head ----
    hc = gin_stack(x, cls_params)                            # (N, c_dim) f32
    iota_gn = jax.lax.broadcasted_iota(jnp.int32, (n_graphs, n_nodes), 0)
    one_hot_f32 = (iota_gn == batch_ref[...]).astype(jnp.float32)   # (G, N)
    counts = jnp.maximum(jnp.sum(one_hot_f32, axis=1, keepdims=True), 1.0)
    inv_counts = pl.reciprocal(counts, approx=True)
    pooled = jnp.dot(one_hot_f32.astype(mxu_dtype), hc.astype(mxu_dtype),
                     preferred_element_type=jnp.float32) * inv_counts
    pred_ref[...] = (jnp.dot(pooled.astype(mxu_dtype),
                             head_w_ref[...].astype(mxu_dtype),
                             preferred_element_type=jnp.float32)
                     + head_b_ref[...])


# ----------------------------------------------------------------------------
# IGM (JAX wrapper around the fused Pallas kernel)
# ----------------------------------------------------------------------------
class IGM:
    def __init__(self, input_dim, out_dim, emb_dim=32, num_layers=2,
                 ratio=0.25, c_dim=-1, c_in="raw", sigma_len=3, seed=0,
                 mxu_dtype=jnp.bfloat16):
        self.input_dim = input_dim
        self.out_dim = out_dim
        self.emb_dim = emb_dim
        self.num_layers = num_layers
        self.ratio = ratio
        self.c_in = c_in
        self.c_dim = emb_dim if c_dim < 0 else c_dim
        self.c_input_dim = input_dim if c_in.lower() == "raw" else emb_dim
        self.mxu_dtype = mxu_dtype

        key = jax.random.PRNGKey(seed)
        ks = iter(jax.random.split(key, 64))

        def lin(kk, din, dout):
            s = 1.0 / jnp.sqrt(jnp.float32(din))
            w = jax.random.uniform(kk, (din, dout), jnp.float32, -s, s)
            return w, jnp.zeros((dout,), jnp.float32)

        # gnn_encoder (GIN approximation of GNN_node_Virtualnode)
        self.enc_w, self.enc_b = [], []
        d_in = input_dim
        for _ in range(num_layers):
            w, b = lin(next(ks), d_in, emb_dim)
            self.enc_w.append(w)
            self.enc_b.append(b)
            d_in = emb_dim

        # edge_att: Linear(2e,4e) -> ReLU -> Linear(4e,1) -> Sigmoid
        att_w1, att_b1 = lin(next(ks), 2 * emb_dim, 4 * emb_dim)
        att_w2, att_b2 = lin(next(ks), 4 * emb_dim, 1)
        # pre-transposed layouts for the feature-major in-kernel edge path
        self.att_w1aT = att_w1[:emb_dim, :].T          # (4e, e)  for h[row]
        self.att_w1bT = att_w1[emb_dim:, :].T          # (4e, e)  for h[col]
        self.att_b1col = att_b1.reshape(-1, 1)         # (4e, 1)
        self.att_w2T = att_w2.T                        # (1, 4e)
        self.att_b2 = att_b2.reshape(1, 1)             # (1, 1)

        # classifier GNN (GIN layers + mean pool + linear head)
        self.cls_w, self.cls_b = [], []
        d_in = self.c_input_dim
        for _ in range(num_layers):
            w, b = lin(next(ks), d_in, self.c_dim)
            self.cls_w.append(w)
            self.cls_b.append(b)
            d_in = self.c_dim
        self.head_w, self.head_b = lin(next(ks), self.c_dim, out_dim)

        # log_sigmas parameter (unused in the default forward path)
        self.log_sigmas = jnp.zeros((sigma_len,), jnp.float32)

    def forward(self, x, edge_index, batch_vec, num_graphs, noise_key,
                return_data="pred"):
        N = x.shape[0]
        E = edge_index.shape[1]

        # pad N to a sublane multiple and E to a lane multiple; padded
        # nodes/edges use index -1 so their one-hot columns are all-zero.
        N_pad = _round_up(max(N, 8), 8)
        E_pad = _round_up(max(E, 128), 128)

        x_p = jnp.zeros((N_pad, self.input_dim), jnp.float32)
        x_p = x_p.at[:N, :].set(x.astype(jnp.float32))

        row = jnp.full((1, E_pad), -1, jnp.int32)
        col = jnp.full((1, E_pad), -1, jnp.int32)
        row = row.at[0, :E].set(edge_index[0].astype(jnp.int32))
        col = col.at[0, :E].set(edge_index[1].astype(jnp.int32))

        batch_ids = jnp.full((1, N_pad), -1, jnp.int32)
        batch_ids = batch_ids.at[0, :N].set(batch_vec.astype(jnp.int32))

        k1, k2 = jax.random.split(noise_key)
        u1 = jnp.full((1, E_pad), 0.5, jnp.float32)
        u2 = jnp.full((1, E_pad), 0.5, jnp.float32)
        u1 = u1.at[0, :E].set(
            jax.random.uniform(k1, (E,), jnp.float32, 1e-10, 1.0 - 1e-10))
        u2 = u2.at[0, :E].set(
            jax.random.uniform(k2, (E,), jnp.float32, 1e-10, 1.0 - 1e-10))

        args = [x_p, row, col, batch_ids, u1, u2]
        for w, b in zip(self.enc_w, self.enc_b):
            args += [w, b.reshape(1, -1)]
        args += [self.att_w1aT, self.att_w1bT, self.att_b1col,
                 self.att_w2T, self.att_b2]
        for w, b in zip(self.cls_w, self.cls_b):
            args += [w, b.reshape(1, -1)]
        args += [self.head_w, self.head_b.reshape(1, -1)]

        kernel = functools.partial(
            _igm_fused_kernel,
            num_enc=self.num_layers, num_cls=self.num_layers,
            eps=0.0, inv_temp=1.0, mxu_dtype=self.mxu_dtype)

        vmem_spec = pl.BlockSpec(memory_space=pltpu.MemorySpace.VMEM)
        batch_pred, ew = pl.pallas_call(
            kernel,
            out_shape=(jax.ShapeDtypeStruct((num_graphs, self.out_dim),
                                            jnp.float32),
                       jax.ShapeDtypeStruct((1, E_pad), jnp.float32)),
            in_specs=[vmem_spec] * len(args),
            out_specs=(vmem_spec, vmem_spec),
            compiler_params=pltpu.CompilerParams(
                vmem_limit_bytes=64 * 1024 * 1024),
        )(*args)

        pred_edge_weight = ew[0, :E]

        # TODO(synk): causal/spurious edge selection, random graph mixing and
        #             masked classifier re-runs (host-side python control flow)
        #             are not translated; pred_edge_weight is still produced
        #             exactly as in the reference forward.
        if return_data == "pred":
            return batch_pred, pred_edge_weight
        return batch_pred, pred_edge_weight


# ----------------------------------------------------------------------------
if __name__ == "__main__":
    # small synthetic graph batch: 2 graphs, 16 nodes each, 64 directed edges
    N_NODES = 32
    N_EDGES = 64
    INPUT_DIM = 16
    EMB_DIM = 32
    OUT_DIM = 3
    NUM_GRAPHS = 2

    key = jax.random.PRNGKey(0)
    kx, ke1, ke2, kn = jax.random.split(key, 4)

    x = jax.random.normal(kx, (N_NODES, INPUT_DIM), jnp.float32)

    # edges: first 32 inside graph 0 (nodes 0..15), last 32 inside graph 1
    src0 = jax.random.randint(ke1, (N_EDGES // 2,), 0, 16)
    dst0 = jax.random.randint(ke2, (N_EDGES // 2,), 0, 16)
    src1 = src0 + 16
    dst1 = dst0 + 16
    edge_index = jnp.stack([jnp.concatenate([src0, src1]),
                            jnp.concatenate([dst0, dst1])], axis=0)

    batch_vec = jnp.concatenate([jnp.zeros((16,), jnp.int32),
                                 jnp.ones((16,), jnp.int32)])

    model = IGM(input_dim=INPUT_DIM, out_dim=OUT_DIM, emb_dim=EMB_DIM,
                num_layers=2, seed=0)

    batch_pred, edge_w = model.forward(x, edge_index, batch_vec,
                                       NUM_GRAPHS, kn, return_data="pred")
    jax.block_until_ready(batch_pred)
    jax.block_until_ready(edge_w)

    assert batch_pred.shape == (NUM_GRAPHS, OUT_DIM)
    assert edge_w.shape == (N_EDGES,)
    assert bool(jnp.all(jnp.isfinite(batch_pred)))
    assert bool(jnp.all((edge_w >= 0.0) & (edge_w <= 1.0)))
    print("KERNEL_OK")
</pallas_src>

<mosaic_0001>
module attributes {stable_mosaic.version = 11 : i64} {
  func.func @_igm_fused_kernel(%arg0: memref<32x16xf32, #tpu.memory_space<vmem>>, %arg1: memref<1x128xi32, #tpu.memory_space<vmem>>, %arg2: memref<1x128xi32, #tpu.memory_space<vmem>>, %arg3: memref<1x32xi32, #tpu.memory_space<vmem>>, %arg4: memref<1x128xf32, #tpu.memory_space<vmem>>, %arg5: memref<1x128xf32, #tpu.memory_space<vmem>>, %arg6: memref<16x32xf32, #tpu.memory_space<vmem>>, %arg7: memref<1x32xf32, #tpu.memory_space<vmem>>, %arg8: memref<32x32xf32, #tpu.memory_space<vmem>>, %arg9: memref<1x32xf32, #tpu.memory_space<vmem>>, %arg10: memref<128x32xf32, #tpu.memory_space<vmem>>, %arg11: memref<128x32xf32, #tpu.memory_space<vmem>>, %arg12: memref<128x1xf32, #tpu.memory_space<vmem>>, %arg13: memref<1x128xf32, #tpu.memory_space<vmem>>, %arg14: memref<1x1xf32, #tpu.memory_space<vmem>>, %arg15: memref<16x32xf32, #tpu.memory_space<vmem>>, %arg16: memref<1x32xf32, #tpu.memory_space<vmem>>, %arg17: memref<32x32xf32, #tpu.memory_space<vmem>>, %arg18: memref<1x32xf32, #tpu.memory_space<vmem>>, %arg19: memref<32x3xf32, #tpu.memory_space<vmem>>, %arg20: memref<1x3xf32, #tpu.memory_space<vmem>>, %arg21: memref<2x3xf32, #tpu.memory_space<vmem>>, %arg22: memref<1x128xf32, #tpu.memory_space<vmem>>) attributes {dimension_semantics = [], scalar_prefetch = 0 : i64, scratch_operands = 0 : i64, tpu.core_type = #tpu.core_type<tc>} {
    %c0 = arith.constant 0 : index
    %c0_0 = arith.constant 0 : index
    %0 = vector.load %arg0[%c0, %c0_0] : memref<32x16xf32, #tpu.memory_space<vmem>>, vector<32x16xf32>
    %1 = tpu.iota {dimensions = array<i32: 0>} : vector<32x128xi32>
    %c0_1 = arith.constant 0 : index
    %c0_2 = arith.constant 0 : index
    %2 = vector.load %arg1[%c0_1, %c0_2] : memref<1x128xi32, #tpu.memory_space<vmem>>, vector<1x128xi32>
    %3 = vector.broadcast %2 : vector<1x128xi32> to vector<32x128xi32>
    %4 = arith.cmpi eq, %1, %3 : vector<32x128xi32>
    %5 = arith.extui %4 : vector<32x128xi1> to vector<32x128xi32>
    %6 = arith.sitofp %5 : vector<32x128xi32> to vector<32x128xf32>
    %7 = arith.truncf %6 : vector<32x128xf32> to vector<32x128xbf16>
    %c0_3 = arith.constant 0 : index
    %c0_4 = arith.constant 0 : index
    %8 = vector.load %arg2[%c0_3, %c0_4] : memref<1x128xi32, #tpu.memory_space<vmem>>, vector<1x128xi32>
    %9 = vector.broadcast %8 : vector<1x128xi32> to vector<32x128xi32>
    %10 = arith.cmpi eq, %1, %9 : vector<32x128xi32>
    %11 = arith.extui %10 : vector<32x128xi1> to vector<32x128xi32>
    %12 = arith.sitofp %11 : vector<32x128xi32> to vector<32x128xf32>
    %13 = arith.truncf %12 : vector<32x128xf32> to vector<32x128xbf16>
    %cst = arith.constant dense<0.000000e+00> : vector<32x32xf32>
    %14 = tpu.matmul %13, %7, %cst {dimension_numbers = #tpu.dot_dimension_numbers<[1], [1], [0], [0], [0, 0, 1, 0], [], []>} : vector<32x128xbf16>, vector<32x128xbf16>, vector<32x32xf32> -> vector<32x32xf32>
    %15 = arith.truncf %14 : vector<32x32xf32> to vector<32x32xbf16>
    %16 = arith.truncf %0 : vector<32x16xf32> to vector<32x16xbf16>
    %cst_5 = arith.constant dense<0.000000e+00> : vector<32x16xf32>
    %17 = tpu.matmul %15, %16, %cst_5 {dimension_numbers = #tpu.dot_dimension_numbers<[1], [0], [0], [1], [0, 0, 1, 1], [], []>} : vector<32x32xbf16>, vector<32x16xbf16>, vector<32x16xf32> -> vector<32x16xf32>
    %cst_6 = arith.constant 1.000000e+00 : f32
    %18 = vector.broadcast %cst_6 : f32 to vector<32x16xf32>
    %19 = arith.mulf %18, %0 : vector<32x16xf32>
    %20 = arith.addf %19, %17 : vector<32x16xf32>
    %21 = arith.truncf %20 : vector<32x16xf32> to vector<32x16xbf16>
    %c0_7 = arith.constant 0 : index
    %c0_8 = arith.constant 0 : index
    %22 = vector.load %arg6[%c0_7, %c0_8] : memref<16x32xf32, #tpu.memory_space<vmem>>, vector<16x32xf32>
    %23 = arith.truncf %22 : vector<16x32xf32> to vector<16x32xbf16>
    %cst_9 = arith.constant dense<0.000000e+00> : vector<32x32xf32>
    %24 = tpu.matmul %21, %23, %cst_9 {dimension_numbers = #tpu.dot_dimension_numbers<[1], [0], [0], [1], [0, 0, 1, 1], [], []>} : vector<32x16xbf16>, vector<16x32xbf16>, vector<32x32xf32> -> vector<32x32xf32>
    %c0_10 = arith.constant 0 : index
    %c0_11 = arith.constant 0 : index
    %25 = vector.load %arg7[%c0_10, %c0_11] : memref<1x32xf32, #tpu.memory_space<vmem>>, vector<1x32xf32>
    %26 = vector.broadcast %25 : vector<1x32xf32> to vector<32x32xf32>
    %27 = arith.addf %24, %26 : vector<32x32xf32>
    %cst_12 = arith.constant 0.000000e+00 : f32
    %28 = vector.broadcast %cst_12 : f32 to vector<32x32xf32>
    %29 = arith.maximumf %27, %28 : vector<32x32xf32>
    %30 = arith.truncf %29 : vector<32x32xf32> to vector<32x32xbf16>
    %cst_13 = arith.constant dense<0.000000e+00> : vector<32x32xf32>
    %31 = tpu.matmul %15, %30, %cst_13 {dimension_numbers = #tpu.dot_dimension_numbers<[1], [0], [0], [1], [0, 0, 1, 1], [], []>} : vector<32x32xbf16>, vector<32x32xbf16>, vector<32x32xf32> -> vector<32x32xf32>
    %cst_14 = arith.constant 1.000000e+00 : f32
    %32 = vector.broadcast %cst_14 : f32 to vector<32x32xf32>
    %33 = arith.mulf %32, %29 : vector<32x32xf32>
    %34 = arith.addf %33, %31 : vector<32x32xf32>
    %35 = arith.truncf %34 : vector<32x32xf32> to vector<32x32xbf16>
    %c0_15 = arith.constant 0 : index
    %c0_16 = arith.constant 0 : index
    %36 = vector.load %arg8[%c0_15, %c0_16] : memref<32x32xf32, #tpu.memory_space<vmem>>, vector<32x32xf32>
    %37 = arith.truncf %36 : vector<32x32xf32> to vector<32x32xbf16>
    %cst_17 = arith.constant dense<0.000000e+00> : vector<32x32xf32>
    %38 = tpu.matmul %35, %37, %cst_17 {dimension_numbers = #tpu.dot_dimension_numbers<[1], [0], [0], [1], [0, 0, 1, 1], [], []>} : vector<32x32xbf16>, vector<32x32xbf16>, vector<32x32xf32> -> vector<32x32xf32>
    %c0_18 = arith.constant 0 : index
    %c0_19 = arith.constant 0 : index
    %39 = vector.load %arg9[%c0_18, %c0_19] : memref<1x32xf32, #tpu.memory_space<vmem>>, vector<1x32xf32>
    %40 = vector.broadcast %39 : vector<1x32xf32> to vector<32x32xf32>
    %41 = arith.addf %38, %40 : vector<32x32xf32>
    %cst_20 = arith.constant 0.000000e+00 : f32
    %42 = vector.broadcast %cst_20 : f32 to vector<32x32xf32>
    %43 = arith.maximumf %41, %42 : vector<32x32xf32>
    %44 = tpu.transpose %43, [1, 0] : vector<32x32xf32> -> vector<32x32xf32>
    %45 = arith.truncf %44 : vector<32x32xf32> to vector<32x32xbf16>
    %cst_21 = arith.constant dense<0.000000e+00> : vector<32x128xf32>
    %46 = tpu.matmul %45, %7, %cst_21 {dimension_numbers = #tpu.dot_dimension_numbers<[1], [0], [0], [1], [0, 0, 1, 1], [], []>} : vector<32x32xbf16>, vector<32x128xbf16>, vector<32x128xf32> -> vector<32x128xf32>
    %cst_22 = arith.constant dense<0.000000e+00> : vector<32x128xf32>
    %47 = tpu.matmul %45, %13, %cst_22 {dimension_numbers = #tpu.dot_dimension_numbers<[1], [0], [0], [1], [0, 0, 1, 1], [], []>} : vector<32x32xbf16>, vector<32x128xbf16>, vector<32x128xf32> -> vector<32x128xf32>
    %c0_23 = arith.constant 0 : index
    %c0_24 = arith.constant 0 : index
    %48 = vector.load %arg10[%c0_23, %c0_24] : memref<128x32xf32, #tpu.memory_space<vmem>>, vector<128x32xf32>
    %49 = arith.truncf %48 : vector<128x32xf32> to vector<128x32xbf16>
    %50 = arith.truncf %46 : vector<32x128xf32> to vector<32x128xbf16>
    %cst_25 = arith.constant dense<0.000000e+00> : vector<128x128xf32>
    %51 = tpu.matmul %49, %50, %cst_25 {dimension_numbers = #tpu.dot_dimension_numbers<[1], [0], [0], [1], [0, 0, 1, 1], [], []>} : vector<128x32xbf16>, vector<32x128xbf16>, vector<128x128xf32> -> vector<128x128xf32>
    %c0_26 = arith.constant 0 : index
    %c0_27 = arith.constant 0 : index
    %52 = vector.load %arg11[%c0_26, %c0_27] : memref<128x32xf32, #tpu.memory_space<vmem>>, vector<128x32xf32>
    %53 = arith.truncf %52 : vector<128x32xf32> to vector<128x32xbf16>
    %54 = arith.truncf %47 : vector<32x128xf32> to vector<32x128xbf16>
    %cst_28 = arith.constant dense<0.000000e+00> : vector<128x128xf32>
    %55 = tpu.matmul %53, %54, %cst_28 {dimension_numbers = #tpu.dot_dimension_numbers<[1], [0], [0], [1], [0, 0, 1, 1], [], []>} : vector<128x32xbf16>, vector<32x128xbf16>, vector<128x128xf32> -> vector<128x128xf32>
    %56 = arith.addf %51, %55 : vector<128x128xf32>
    %c0_29 = arith.constant 0 : index
    %c0_30 = arith.constant 0 : index
    %57 = vector.load %arg12[%c0_29, %c0_30] : memref<128x1xf32, #tpu.memory_space<vmem>>, vector<128x1xf32>
    %58 = vector.broadcast %57 : vector<128x1xf32> to vector<128x128xf32>
    %59 = arith.addf %56, %58 : vector<128x128xf32>
    %cst_31 = arith.constant 0.000000e+00 : f32
    %60 = vector.broadcast %cst_31 : f32 to vector<128x128xf32>
    %61 = arith.maximumf %59, %60 : vector<128x128xf32>
    %c0_32 = arith.constant 0 : index
    %c0_33 = arith.constant 0 : index
    %62 = vector.load %arg13[%c0_32, %c0_33] : memref<1x128xf32, #tpu.memory_space<vmem>>, vector<1x128xf32>
    %63 = arith.truncf %62 : vector<1x128xf32> to vector<1x128xbf16>
    %64 = arith.truncf %61 : vector<128x128xf32> to vector<128x128xbf16>
    %cst_34 = arith.constant dense<0.000000e+00> : vector<1x128xf32>
    %65 = tpu.matmul %63, %64, %cst_34 {dimension_numbers = #tpu.dot_dimension_numbers<[1], [0], [0], [1], [0, 0, 1, 1], [], []>} : vector<1x128xbf16>, vector<128x128xbf16>, vector<1x128xf32> -> vector<1x128xf32>
    %c0_35 = arith.constant 0 : index
    %c0_36 = arith.constant 0 : index
    %66 = vector.load %arg14[%c0_35, %c0_36] : memref<1x1xf32, #tpu.memory_space<vmem>>, vector<1x1xf32>
    %67 = vector.broadcast %66 : vector<1x1xf32> to vector<1x128xf32>
    %68 = arith.addf %65, %67 : vector<1x128xf32>
    %c0_37 = arith.constant 0 : index
    %c0_38 = arith.constant 0 : index
    %69 = vector.load %arg4[%c0_37, %c0_38] : memref<1x128xf32, #tpu.memory_space<vmem>>, vector<1x128xf32>
    %70 = math.log %69 : vector<1x128xf32>
    %cst_39 = arith.constant 0.000000e+00 : f32
    %71 = vector.broadcast %cst_39 : f32 to vector<1x128xf32>
    %72 = arith.subf %71, %70 : vector<1x128xf32>
    %73 = math.log %72 : vector<1x128xf32>
    %cst_40 = arith.constant 0.000000e+00 : f32
    %74 = vector.broadcast %cst_40 : f32 to vector<1x128xf32>
    %75 = arith.subf %74, %73 : vector<1x128xf32>
    %c0_41 = arith.constant 0 : index
    %c0_42 = arith.constant 0 : index
    %76 = vector.load %arg5[%c0_41, %c0_42] : memref<1x128xf32, #tpu.memory_space<vmem>>, vector<1x128xf32>
    %77 = math.log %76 : vector<1x128xf32>
    %cst_43 = arith.constant 0.000000e+00 : f32
    %78 = vector.broadcast %cst_43 : f32 to vector<1x128xf32>
    %79 = arith.subf %78, %77 : vector<1x128xf32>
    %80 = math.log %79 : vector<1x128xf32>
    %cst_44 = arith.constant 0.000000e+00 : f32
    %81 = vector.broadcast %cst_44 : f32 to vector<1x128xf32>
    %82 = arith.subf %81, %80 : vector<1x128xf32>
    %83 = arith.addf %68, %75 : vector<1x128xf32>
    %84 = arith.subf %83, %82 : vector<1x128xf32>
    %cst_45 = arith.constant 1.000000e+00 : f32
    %85 = vector.broadcast %cst_45 : f32 to vector<1x128xf32>
    %86 = arith.mulf %84, %85 : vector<1x128xf32>
    %87 = arith.negf %86 : vector<1x128xf32>
    %88 = math.exp %87 : vector<1x128xf32>
    %cst_46 = arith.constant 1.000000e+00 : f32
    %89 = vector.broadcast %cst_46 : f32 to vector<1x128xf32>
    %90 = arith.addf %89, %88 : vector<1x128xf32>
    %91 = arith.divf %89, %90 : vector<1x128xf32>
    %c0_47 = arith.constant 0 : index
    %c0_48 = arith.constant 0 : index
    %92 = vector.load %arg22[%c0_47, %c0_48] : memref<1x128xf32, #tpu.memory_space<vmem>>, vector<1x128xf32>
    tpu.vector_store %arg22[%c0_47, %c0_48], %91 {strides = array<i32>} : memref<1x128xf32, #tpu.memory_space<vmem>>, vector<1x128xf32>,
    %93 = arith.truncf %0 : vector<32x16xf32> to vector<32x16xbf16>
    %cst_49 = arith.constant dense<0.000000e+00> : vector<32x16xf32>
    %94 = tpu.matmul %15, %93, %cst_49 {dimension_numbers = #tpu.dot_dimension_numbers<[1], [0], [0], [1], [0, 0, 1, 1], [], []>} : vector<32x32xbf16>, vector<32x16xbf16>, vector<32x16xf32> -> vector<32x16xf32>
    %cst_50 = arith.constant 1.000000e+00 : f32
    %95 = vector.broadcast %cst_50 : f32 to vector<32x16xf32>
    %96 = arith.mulf %95, %0 : vector<32x16xf32>
    %97 = arith.addf %96, %94 : vector<32x16xf32>
    %98 = arith.truncf %97 : vector<32x16xf32> to vector<32x16xbf16>
    %c0_51 = arith.constant 0 : index
    %c0_52 = arith.constant 0 : index
    %99 = vector.load %arg15[%c0_51, %c0_52] : memref<16x32xf32, #tpu.memory_space<vmem>>, vector<16x32xf32>
    %100 = arith.truncf %99 : vector<16x32xf32> to vector<16x32xbf16>
    %cst_53 = arith.constant dense<0.000000e+00> : vector<32x32xf32>
    %101 = tpu.matmul %98, %100, %cst_53 {dimension_numbers = #tpu.dot_dimension_numbers<[1], [0], [0], [1], [0, 0, 1, 1], [], []>} : vector<32x16xbf16>, vector<16x32xbf16>, vector<32x32xf32> -> vector<32x32xf32>
    %c0_54 = arith.constant 0 : index
    %c0_55 = arith.constant 0 : index
    %102 = vector.load %arg16[%c0_54, %c0_55] : memref<1x32xf32, #tpu.memory_space<vmem>>, vector<1x32xf32>
    %103 = vector.broadcast %102 : vector<1x32xf32> to vector<32x32xf32>
    %104 = arith.addf %101, %103 : vector<32x32xf32>
    %cst_56 = arith.constant 0.000000e+00 : f32
    %105 = vector.broadcast %cst_56 : f32 to vector<32x32xf32>
    %106 = arith.maximumf %104, %105 : vector<32x32xf32>
    %107 = arith.truncf %106 : vector<32x32xf32> to vector<32x32xbf16>
    %cst_57 = arith.constant dense<0.000000e+00> : vector<32x32xf32>
    %108 = tpu.matmul %15, %107, %cst_57 {dimension_numbers = #tpu.dot_dimension_numbers<[1], [0], [0], [1], [0, 0, 1, 1], [], []>} : vector<32x32xbf16>, vector<32x32xbf16>, vector<32x32xf32> -> vector<32x32xf32>
    %cst_58 = arith.constant 1.000000e+00 : f32
    %109 = vector.broadcast %cst_58 : f32 to vector<32x32xf32>
    %110 = arith.mulf %109, %106 : vector<32x32xf32>
    %111 = arith.addf %110, %108 : vector<32x32xf32>
    %112 = arith.truncf %111 : vector<32x32xf32> to vector<32x32xbf16>
    %c0_59 = arith.constant 0 : index
    %c0_60 = arith.constant 0 : index
    %113 = vector.load %arg17[%c0_59, %c0_60] : memref<32x32xf32, #tpu.memory_space<vmem>>, vector<32x32xf32>
    %114 = arith.truncf %113 : vector<32x32xf32> to vector<32x32xbf16>
    %cst_61 = arith.constant dense<0.000000e+00> : vector<32x32xf32>
    %115 = tpu.matmul %112, %114, %cst_61 {dimension_numbers = #tpu.dot_dimension_numbers<[1], [0], [0], [1], [0, 0, 1, 1], [], []>} : vector<32x32xbf16>, vector<32x32xbf16>, vector<32x32xf32> -> vector<32x32xf32>
    %c0_62 = arith.constant 0 : index
    %c0_63 = arith.constant 0 : index
    %116 = vector.load %arg18[%c0_62, %c0_63] : memref<1x32xf32, #tpu.memory_space<vmem>>, vector<1x32xf32>
    %117 = vector.broadcast %116 : vector<1x32xf32> to vector<32x32xf32>
    %118 = arith.addf %115, %117 : vector<32x32xf32>
    %cst_64 = arith.constant 0.000000e+00 : f32
    %119 = vector.broadcast %cst_64 : f32 to vector<32x32xf32>
    %120 = arith.maximumf %118, %119 : vector<32x32xf32>
    %121 = tpu.iota {dimensions = array<i32: 0>} : vector<2x32xi32>
    %c0_65 = arith.constant 0 : index
    %c0_66 = arith.constant 0 : index
    %122 = vector.load %arg3[%c0_65, %c0_66] : memref<1x32xi32, #tpu.memory_space<vmem>>, vector<1x32xi32>
    %123 = vector.broadcast %122 : vector<1x32xi32> to vector<2x32xi32>
    %124 = arith.cmpi eq, %121, %123 : vector<2x32xi32>
    %125 = arith.extui %124 : vector<2x32xi1> to vector<2x32xi32>
    %126 = arith.sitofp %125 : vector<2x32xi32> to vector<2x32xf32>
    %cst_67 = arith.constant dense<0.000000e+00> : vector<2xf32>
    %127 = vector.multi_reduction <add>, %126, %cst_67 [1] : vector<2x32xf32> to vector<2xf32>
    %128 = vector.shape_cast %127 : vector<2xf32> to vector<2x1xf32>
    %cst_68 = arith.constant 1.000000e+00 : f32
    %129 = vector.broadcast %cst_68 : f32 to vector<2x1xf32>
    %130 = arith.maximumf %128, %129 : vector<2x1xf32>
    %131 = tpu.reciprocal %130 {approx = true} : vector<2x1xf32> -> vector<2x1xf32>
    %132 = arith.truncf %126 : vector<2x32xf32> to vector<2x32xbf16>
    %133 = arith.truncf %120 : vector<32x32xf32> to vector<32x32xbf16>
    %cst_69 = arith.constant dense<0.000000e+00> : vector<2x32xf32>
    %134 = tpu.matmul %132, %133, %cst_69 {dimension_numbers = #tpu.dot_dimension_numbers<[1], [0], [0], [1], [0, 0, 1, 1], [], []>} : vector<2x32xbf16>, vector<32x32xbf16>, vector<2x32xf32> -> vector<2x32xf32>
    %135 = vector.broadcast %131 : vector<2x1xf32> to vector<2x32xf32>
    %136 = arith.mulf %134, %135 : vector<2x32xf32>
    %137 = arith.truncf %136 : vector<2x32xf32> to vector<2x32xbf16>
    %c0_70 = arith.constant 0 : index
    %c0_71 = arith.constant 0 : index
    %138 = vector.load %arg19[%c0_70, %c0_71] : memref<32x3xf32, #tpu.memory_space<vmem>>, vector<32x3xf32>
    %139 = arith.truncf %138 : vector<32x3xf32> to vector<32x3xbf16>
    %cst_72 = arith.constant dense<0.000000e+00> : vector<2x3xf32>
    %140 = tpu.matmul %137, %139, %cst_72 {dimension_numbers = #tpu.dot_dimension_numbers<[1], [0], [0], [1], [0, 0, 1, 1], [], []>} : vector<2x32xbf16>, vector<32x3xbf16>, vector<2x3xf32> -> vector<2x3xf32>
    %c0_73 = arith.constant 0 : index
    %c0_74 = arith.constant 0 : index
    %141 = vector.load %arg20[%c0_73, %c0_74] : memref<1x3xf32, #tpu.memory_space<vmem>>, vector<1x3xf32>
    %142 = vector.broadcast %141 : vector<1x3xf32> to vector<2x3xf32>
    %143 = arith.addf %140, %142 : vector<2x3xf32>
    %c0_75 = arith.constant 0 : index
    %c0_76 = arith.constant 0 : index
    %144 = vector.load %arg21[%c0_75, %c0_76] : memref<2x3xf32, #tpu.memory_space<vmem>>, vector<2x3xf32>
    tpu.vector_store %arg21[%c0_75, %c0_76], %143 {strides = array<i32>} : memref<2x3xf32, #tpu.memory_space<vmem>>, vector<2x3xf32>,
    return
  }
}

</mosaic_0001>

<bundles_post_ra>
// kernel: tpu_custom_call.1
= control target key start
LH: loop header
LB: loop body
LE: loop exit
PB: predicated region body
PF: predicated region fallthrough
CT: control target
= control target key end

     0   :  { %s1591_s0 = inlined_call_operand.vmem [shape: f32[32,16], index: 0, kind: input, shape index: {}]   ;;  %s1592_s1 = inlined_call_operand.vmem [shape: s32[1,128], index: 1, kind: input, shape index: {}]   ;;  %s1593_s2 = inlined_call_operand.vmem [shape: s32[1,128], index: 2, kind: input, shape index: {}]   ;;  %s1594_s3 = inlined_call_operand.vmem [shape: s32[1,32], index: 3, kind: input, shape index: {}]   ;;  %s1595_s4 = inlined_call_operand.vmem [shape: f32[1,128], index: 4, kind: input, shape index: {}]   ;;  %s1596_s5 = inlined_call_operand.vmem [shape: f32[1,128], index: 5, kind: input, shape index: {}]   ;;  %s1597_s6 = inlined_call_operand.vmem [shape: f32[16,32], index: 6, kind: input, shape index: {}]   ;;  %s1598_s7 = inlined_call_operand.vmem [shape: f32[1,32], index: 7, kind: input, shape index: {}]   ;;  %s1599_s8 = inlined_call_operand.vmem [shape: f32[32,32], index: 8, kind: input, shape index: {}]   ;;  %s1600_s9 = inlined_call_operand.vmem [shape: f32[1,32], index: 9, kind: input, shape index: {}]   ;;  %s1601_s10 = inlined_call_operand.vmem [shape: f32[128,32], index: 10, kind: input, shape index: {}]   ;;  %s1602_s11 = inlined_call_operand.vmem [shape: f32[128,32], index: 11, kind: input, shape index: {}]   ;;  %s1603_s12 = inlined_call_operand.vmem [shape: f32[128,1], index: 12, kind: input, shape index: {}]   ;;  %s1604_s13 = inlined_call_operand.vmem [shape: f32[1,128], index: 13, kind: input, shape index: {}]   ;;  %s1605_s14 = inlined_call_operand.<no memory space> [shape: f32[1,1], index: 14, kind: input, shape index: {}]   ;;  %s1606_s15 = inlined_call_operand.vmem [shape: f32[16,32], index: 15, kind: input, shape index: {}]   ;;  %s1607_s16 = inlined_call_operand.vmem [shape: f32[1,32], index: 16, kind: input, shape index: {}]   ;;  %s1608_s17 = inlined_call_operand.vmem [shape: f32[32,32], index: 17, kind: input, shape index: {}]   ;;  %s1609_s18 = inlined_call_operand.vmem [shape: f32[1,32], index: 18, kind: input, shape index: {}]   ;;  %s1610_s19 = inlined_call_operand.vmem [shape: f32[32,3], index: 19, kind: input, shape index: {}]   ;;  %s1611_s20 = inlined_call_operand.vmem [shape: f32[1,3], index: 20, kind: input, shape index: {}]   ;;  %s1612_s21 = inlined_call_operand.hbm [shape: f32[2,3], index: 21, kind: output, shape index: {0}]   ;;  %s1613_s22 = inlined_call_operand.hbm [shape: f32[1,128], index: 22, kind: output, shape index: {1}]  }
   0x1   :  { %1616 = sst [smem:[#allocation9_spill]] %s1591_s0  ;;  %v28_v0 = vstv %s1605_s14 }
   0x2   :  { %1617 = sst [smem:[#allocation10_spill]] %s1592_s1  ;;  %29 = vst [vmem:[#allocation2] sm:$0x1] %v28_v0 }
   0x3   :  { %1618 = sst [smem:[#allocation11_spill]] %s1593_s2 }
   0x4   :  { %1619 = sst [smem:[#allocation12_spill]] %s1594_s3 }
   0x5   :  { %1620 = sst [smem:[#allocation13_spill]] %s1595_s4 }
   0x6   :  { %1621 = sst [smem:[#allocation14_spill]] %s1596_s5 }
   0x7   :  { %1622 = sst [smem:[#allocation15_spill]] %s1597_s6 }
   0x8   :  { %30 = vsyncpa [#allocation4], 0  ;;  %v79_v1 = vlaneseq  ;;  %s1623_s4 = sld [smem:[#allocation10_spill]] }
   0xa   :  { %v1202_v3 = vshrl.u32 %v79_v1, 7 }
   0xc   :  { %v82_v4 = vadd.s32 16, %v1202_v3  ;;  %v83_v5 = vadd.s32 24, %v1202_v3 }
   0xe   :  { %v1002_v2 = vld [vmem:[%s1623_s4] ss:$0 sm:$0xff] }
   0xf   :  { %31 = vsyncpa [#allocation6], 0  ;;  %vm88_vm0 = vcmp.eq.s32.totalorder %v82_v4, %v1002_v2  ;;  %vm89_vm1 = vcmp.eq.s32.totalorder %v83_v5, %v1002_v2  ;;  %v81_v6 = vadd.s32 8, %v1202_v3  ;;  %v1076_v8 = vmov 1.0|1.0   ;;  %s1628_s23 = sld [smem:[#allocation11_spill]] }
  0x10   :  { %vm1207_vm2 = vmpackc.low %vm89_vm1, %vm88_vm0  ;;  %vm86_vm3 = vcmp.eq.s32.totalorder %v1202_v3, %v1002_v2  ;;  %s1633_s24 = sld [smem:[#allocation9_spill]]  ;;  %vm139_vm12 = vcmask 261120   ;;  %vm178_vm13 = vcmask 130048   ;;  %v1004_v41 = vld [vmem:[%s1598_s7] ss:$0 sm:$0xff]  ;;  %v237_v53 = vld [vmem:[%s1599_s8 + $0x10] sm:$0xff] }
  0x11   :  { %941 = vmatpush.bf16.xpose.msk.msra.mxu0 %vm1207_vm2, %v1076_v8  ;;  %vm87_vm4 = vcmp.eq.s32.totalorder %v81_v6, %v1002_v2  ;;  %s1634_s30 = sld [smem:[#allocation15_spill]]  ;;  %v238_v54 = vld [vmem:[%s1599_s8 + $0x18] sm:$0xff]  ;;  %v235_v56 = vld [vmem:[%s1599_s8] sm:$0xff]  ;;  %v236_v57 = vld [vmem:[%s1599_s8 + $0x8] sm:$0xff] }
  0x12   :  { %vm1215_vm5 = vmpackc.low %vm87_vm4, %vm86_vm3  ;;  %v240_v55 = vpack.c.bf16 %v238_v54, %v237_v53  ;;  %v239_v58 = vpack.c.bf16 %v236_v57, %v235_v56  ;;  %v353_v53 = vld [vmem:[%s1601_s10 + $0x8] sm:$0xff]  ;;  %s1635_s8 = sld [smem:[#allocation13_spill]]  ;;  %vm845_vm3 = vcmask 254976   ;;  %vm898_vm4 = vcmask 17408  }
  0x13   :  { %s1636_s29 = sld [smem:[#allocation14_spill]] }
  0x14   :  { %257 = vmatpush.bf16.msra.mxu2 %v240_v55  ;;  %s1637_s5 = sld [smem:[#allocation12_spill]] }
  0x15   :  { %v1003_v10 = vld [vmem:[%s1628_s23] ss:$0 sm:$0xff] }
  0x16   :  { %vm102_vm6 = vcmp.eq.s32.totalorder %v1202_v3, %v1003_v10  ;;  %vm103_vm7 = vcmp.eq.s32.totalorder %v81_v6, %v1003_v10  ;;  %vm104_vm9 = vcmp.eq.s32.totalorder %v82_v4, %v1003_v10  ;;  %vm105_vm10 = vcmp.eq.s32.totalorder %v83_v5, %v1003_v10  ;;  %v77_v13 = vld [vmem:[%s1633_s24 + $0x10] sm:$0xff]  ;;  %v78_v14 = vld [vmem:[%s1633_s24 + $0x18] sm:$0xff]  ;;  %v75_v16 = vld [vmem:[%s1633_s24] sm:$0xff] }
  0x17   :  { %vm1226_vm8 = vmpackc.low %vm103_vm7, %vm102_vm6  ;;  %v138_v15 = vpack.c.bf16 %v78_v14, %v77_v13  ;;  %v76_v17 = vld [vmem:[%s1633_s24 + $0x8] sm:$0xff]  ;;  %v171_v25 = vld [vmem:[%s1634_s30] sm:$0xff] }
  0x18   :  { %vm1233_vm11 = vmpackc.low %vm105_vm10, %vm104_vm9  ;;  %v137_v18 = vpack.c.bf16 %v76_v17, %v75_v16  ;;  %v172_v26 = vld [vmem:[%s1634_s30 + $0x8] sm:$0xff]  ;;  %258 = vmatpush.bf16.msra.mxu2 %v239_v58  ;;  %v1005_v6 = vld [vmem:[%s1600_s9] ss:$0 sm:$0xff]  ;;  %s918_s9 = sshll.u32 %s1613_s22, 4  ;;  %s919_s9 = int_to_ptr.hbm [resolvable:$true] %s918_s9 }
  0x19   :  { %943 = vmatpush.bf16.xpose.msk.msra.mxu0 %vm1215_vm5, %v1076_v8  ;;  %152 = vmatpush.bf16.msra.mxu1 %v138_v15  ;;  %v173_v27 = vpack.c.bf16 %v172_v26, %v171_v25  ;;  %v378_v58 = vld [vmem:[%s1602_s11] sm:$0xff] }
  0x1b   :  { %192 = vmatpush.bf16.msra.mxu3 %v173_v27 }
  0x1d   :  { %153 = vmatpush.bf16.msra.mxu1 %v137_v18 }
  0x20   :  { %945 = vmatmul.msk.bf16.vlgmr.msra.gmra.mxu0 %vm1226_vm8, %v1076_v8 }
  0x21   :  { %957 = vmatpush.bf16.msk.msrb.mxu1 %vm1207_vm2, %v1076_v8 }
  0x25   :  { %959 = vmatpush.bf16.msk.msrb.mxu1 %vm1215_vm5, %v1076_v8 }
  0x30   :  { %947 = vmatmul.msk.bf16.gmra.mxu0 %vm1233_vm11, %v1076_v8 }
  0x9d   :  { %v125_v19 = vpop.f32.mrf.mxu0 }
  0xa5   :  { %v127_v20 = vpop.f32.mrf.mxu0 }
  0xa6   :  { %v1258_v21 = vpack.c.bf16 %v127_v20, %v125_v19  ;;  %v744_v19 = vld [vmem:[%s1606_s15] sm:$0xff]  ;;  %v745_v20 = vld [vmem:[%s1606_s15 + $0x8] sm:$0xff]  ;;  %s1080_s15 = smov [#allocation3]  }
  0xa7   :  { %s905_s30 = sshll.u32 %s1080_s15, 4  ;;  %s906_s30 = int_to_ptr.vmem [resolvable:$true] %s905_s30 }
  0xa8   :  { %948 = vmatmul.msk.bf16.vlgmr.msra.gmra.mxu1 %vm139_vm12, %v1258_v21 }
  0xad   :  { %v130_v22 = vpop.f32.mrf.mxu0 }
  0xb5   :  { %v132_v23 = vpop.f32.mrf.mxu0 }
  0xb6   :  { %v1262_v24 = vpack.c.bf16 %v132_v23, %v130_v22  ;;  %v746_v22 = vpack.c.bf16 %v745_v20, %v744_v19  ;;  %v360_v20 = vld [vmem:[%s1601_s10 + $0x40] sm:$0xff] }
  0xb8   :  { %949 = vmatmul.msk.bf16.gmra.mxu1 %vm139_vm12, %v1262_v24 }
 0x125   :  { %v155_v28 = vpop.f32.mrf.mxu1 }
 0x126   :  { %v165_v30 = vadd.f32 %v155_v28, %v75_v16 }
 0x12d   :  { %v157_v29 = vpop.f32.mrf.mxu1 }
 0x12e   :  { %v166_v31 = vadd.f32 %v157_v29, %v76_v17 }
 0x130   :  { %v1272_v32 = vpack.c.bf16 %v166_v31, %v165_v30  ;;  %v564_v30 = vld [vmem:[%s1603_s12 + $0x70] sm:$0xff]  ;;  %v1077_v31 = vmov 0  }
 0x131   :  { %999 = vset.pattern.permute.xlu1 %v1077_v31  ;;  %1000 = vset.pattern.permute.xlu2 %v1077_v31 }
 0x132   :  { %950 = vmatmul.msk.bf16.vlgmr.msra.gmra.mxu3 %vm178_vm13, %v1272_v32  ;;  %638 = vperm.xlu1 %999, %v564_v30   ;;  %v362_v30 = vld [vmem:[%s1601_s10 + $0x50] sm:$0xff] }
 0x135   :  { %v160_v33 = vpop.f32.mrf.mxu1 }
 0x136   :  { %v167_v35 = vadd.f32 %v160_v33, %v77_v13  ;;  %v565_v33 = vld [vmem:[%s1603_s12 + $0x78] sm:$0xff] }
 0x13a   :  { %643 = vperm.xlu1 %999, %v565_v33  }
 0x13d   :  { %v162_v34 = vpop.f32.mrf.mxu1 }
 0x13e   :  { %v168_v36 = vadd.f32 %v162_v34, %v78_v14  ;;  %v562_v34 = vld [vmem:[%s1603_s12 + $0x60] sm:$0xff] }
 0x13f   :  { %628 = vperm.xlu2 %1000, %v562_v34  }
 0x140   :  { %v1276_v37 = vpack.c.bf16 %v168_v36, %v167_v35  ;;  %v558_v35 = vld [vmem:[%s1603_s12 + $0x40] sm:$0xff] }
 0x142   :  { %951 = vmatmul.msk.bf16.gmra.mxu3 %vm178_vm13, %v1276_v37 }
 0x1b5   :  { %v194_v38 = vpop.f32.mrf.mxu3 }
 0x1b6   :  { %v195_v46 = vadd.f32 %v1004_v41, %v194_v38  ;;  %v557_v38 = vld [vmem:[%s1603_s12 + $0x38] sm:$0xff] }
 0x1b8   :  { %v204_v51 = vmax.f32 %v195_v46, 0.0  ;;  %v553_v46 = vld [vmem:[%s1603_s12 + $0x18] sm:$0xff] }
 0x1bd   :  { %v196_v39 = vpop.f32.mrf.mxu3 }
 0x1be   :  { %v197_v44 = vadd.f32 %v1004_v41, %v196_v39 }
 0x1c0   :  { %v205_v49 = vmax.f32 %v197_v44, 0.0 }
 0x1c2   :  { %v208_v52 = vpack.c.bf16 %v205_v49, %v204_v51 }
 0x1c5   :  { %v199_v40 = vpop.f32.mrf.mxu3 }
 0x1c6   :  { %v200_v42 = vadd.f32 %v1004_v41, %v199_v40 }
 0x1c8   :  { %v206_v47 = vmax.f32 %v200_v42, 0.0  ;;  %v555_v42 = vld [vmem:[%s1603_s12 + $0x28] sm:$0xff] }
 0x1cd   :  { %v201_v43 = vpop.f32.mrf.mxu3 }
 0x1ce   :  { %v202_v45 = vadd.f32 %v1004_v41, %v201_v43  ;;  %v561_v41 = vld [vmem:[%s1603_s12 + $0x58] sm:$0xff] }
 0x1d0   :  { %v207_v48 = vmax.f32 %v202_v45, 0.0  ;;  %v559_v45 = vld [vmem:[%s1603_s12 + $0x48] sm:$0xff] }
 0x1d2   :  { %v209_v50 = vpack.c.bf16 %v207_v48, %v206_v47 }
 0x1d4   :  { %216 = vmatpush.bf16.msrb.mxu3 %v209_v50  ;;  %v554_v50 = vld [vmem:[%s1603_s12 + $0x20] sm:$0xff] }
 0x1d8   :  { %217 = vmatpush.bf16.msrb.mxu3 %v208_v52  ;;  %v352_v52 = vld [vmem:[%s1601_s10] sm:$0xff] }
 0x1d9   :  { %v368_v56 = vpack.c.bf16 %v353_v53, %v352_v52  ;;  %v392_v53 = vld [vmem:[%s1602_s11 + $0x70] sm:$0xff] }
 0x1db   :  { %952 = vmatmul.msk.bf16.vlgmr.msrb.gmra.mxu3 %vm139_vm12, %v1258_v21 }
 0x1dc   :  { %963 = vmatpush.bf16.msk.msra.mxu3 %vm1233_vm11, %v1076_v8 }
 0x1e0   :  { %965 = vmatpush.bf16.msk.msra.mxu3 %vm1226_vm8, %v1076_v8 }
 0x1e4   :  { %758 = vmatpush.bf16.msrb.mxu3 %v746_v22  ;;  %v361_v22 = vld [vmem:[%s1601_s10 + $0x48] sm:$0xff] }
 0x1eb   :  { %953 = vmatmul.msk.bf16.gmra.mxu3 %vm139_vm12, %v1262_v24 }
 0x25e   :  { %v219_v59 = vpop.f32.mrf.mxu3 }
 0x25f   :  { %v229_v61 = vadd.f32 %v219_v59, %v204_v51  ;;  %v551_v51 = vld [vmem:[%s1603_s12 + $0x8] sm:$0xff] }
 0x260   :  { %v379_v59 = vld [vmem:[%s1602_s11 + $0x8] sm:$0xff] }
 0x266   :  { %v221_v60 = vpop.f32.mrf.mxu3 }
 0x267   :  { %v230_v62 = vadd.f32 %v221_v60, %v205_v49 }
 0x269   :  { %v233_v63 = vpack.c.bf16 %v230_v62, %v229_v61  ;;  %v552_v61 = vld [vmem:[%s1603_s12 + $0x10] sm:$0xff]  ;;  %v394_v62 = vpack.c.bf16 %v379_v59, %v378_v58 }
 0x26b   :  { %954 = vmatmul.msk.bf16.vlgmr.msra.gmra.mxu2 %vm139_vm12, %v233_v63  ;;  %v550_v63 = vld [vmem:[%s1603_s12] sm:$0xff] }
 0x26e   :  { %v224_v0 = vpop.f32.mrf.mxu3 }
 0x26f   :  { %v231_v2 = vadd.f32 %v224_v0, %v206_v47  ;;  %v354_v0 = vld [vmem:[%s1601_s10 + $0x10] sm:$0xff] }
 0x276   :  { %v226_v1 = vpop.f32.mrf.mxu3 }
 0x277   :  { %v232_v4 = vadd.f32 %v226_v1, %v207_v48  ;;  %v355_v1 = vld [vmem:[%s1601_s10 + $0x18] sm:$0xff] }
 0x279   :  { %v234_v5 = vpack.c.bf16 %v232_v4, %v231_v2  ;;  %v369_v2 = vpack.c.bf16 %v355_v1, %v354_v0  ;;  %v380_v4 = vld [vmem:[%s1602_s11 + $0x10] sm:$0xff] }
 0x27b   :  { %955 = vmatmul.msk.bf16.gmra.mxu2 %vm139_vm12, %v234_v5  ;;  %v381_v5 = vld [vmem:[%s1602_s11 + $0x18] sm:$0xff] }
 0x2ee   :  { %v260_v7 = vpop.f32.mrf.mxu2 }
 0x2ef   :  { %v261_v8 = vadd.f32 %v1005_v6, %v260_v7  ;;  %v356_v7 = vld [vmem:[%s1601_s10 + $0x20] sm:$0xff] }
 0x2f1   :  { %v270_v9 = vmax.f32 %v261_v8, 0.0  ;;  %v357_v8 = vld [vmem:[%s1601_s10 + $0x28] sm:$0xff] }
 0x2f3   :  { %274 = vxpose.xlu0.b32.start [1/4] (short) (narrow) %v270_v9, 32  ;;  %v370_v9 = vpack.c.bf16 %v357_v8, %v356_v7 }
 0x2f6   :  { %v262_v10 = vpop.f32.mrf.mxu2 }
 0x2f7   :  { %v263_v11 = vadd.f32 %v1005_v6, %v262_v10  ;;  %v382_v10 = vld [vmem:[%s1602_s11 + $0x20] sm:$0xff] }
 0x2f9   :  { %v271_v12 = vmax.f32 %v263_v11, 0.0  ;;  %v383_v11 = vld [vmem:[%s1602_s11 + $0x28] sm:$0xff] }
 0x2fb   :  { %275 = vxpose.xlu0.b32.cont [2/4] (short) (narrow) %v271_v12, 32  ;;  %v556_v12 = vld [vmem:[%s1603_s12 + $0x30] sm:$0xff] }
 0x2fe   :  { %v265_v13 = vpop.f32.mrf.mxu2 }
 0x2ff   :  { %v266_v14 = vadd.f32 %v1005_v6, %v265_v13  ;;  %v396_v13 = vpack.c.bf16 %v383_v11, %v382_v10 }
 0x301   :  { %v272_v15 = vmax.f32 %v266_v14, 0.0  ;;  %v358_v14 = vld [vmem:[%s1601_s10 + $0x30] sm:$0xff] }
 0x303   :  { %276 = vxpose.xlu0.b32.cont [3/4] (short) (narrow) %v272_v15, 32  ;;  %v359_v15 = vld [vmem:[%s1601_s10 + $0x38] sm:$0xff] }
 0x306   :  { %v267_v16 = vpop.f32.mrf.mxu2 }
 0x307   :  { %v268_v17 = vadd.f32 %v1005_v6, %v267_v16  ;;  %v395_v6 = vpack.c.bf16 %v381_v5, %v380_v4  ;;  %v371_v16 = vpack.c.bf16 %v359_v15, %v358_v14 }
 0x309   :  { %v273_v18 = vmax.f32 %v268_v17, 0.0  ;;  %v384_v17 = vld [vmem:[%s1602_s11 + $0x30] sm:$0xff] }
 0x30b   :  { %277 = vxpose.xlu0.b32.end [4/4] (short) (narrow) %v273_v18, 32  ;;  %v385_v18 = vld [vmem:[%s1602_s11 + $0x38] sm:$0xff] }
 0x30c   :  { %v397_v19 = vpack.c.bf16 %v385_v18, %v384_v17 }
 0x372   :  { %1001 = vset.pattern.permute.xlu0 %v1077_v31  ;;  %v363_v31 = vld [vmem:[%s1601_s10 + $0x58] sm:$0xff] }
 0x373   :  { %v373_v33 = vpack.c.bf16 %v363_v31, %v362_v30 }
 0x379   :  { %598 = vperm.xlu0 %1001, %v556_v12  }
 0x397   :  { %v290_v23 = vpop.trf.xlu0 }
 0x39f   :  { %v291_v25 = vpop.trf.xlu0 }
 0x3a0   :  { %v306_v26 = vpack.c.bf16 %v291_v25, %v290_v23  ;;  %v372_v23 = vpack.c.bf16 %v361_v22, %v360_v20  ;;  %v386_v25 = vld [vmem:[%s1602_s11 + $0x40] sm:$0xff] }
 0x3a2   :  { %960 = vmatmul.msk.bf16.vlgmr.msrb.gmra.mxu1 %vm139_vm12, %v306_v26  ;;  %966 = vmatmul.msk.bf16.vlgmr.msra.gmra.mxu3 %vm139_vm12, %v306_v26  ;;  %v387_v26 = vld [vmem:[%s1602_s11 + $0x48] sm:$0xff] }
 0x3a7   :  { %v292_v27 = vpop.trf.xlu0 }
 0x3af   :  { %v293_v28 = vpop.trf.xlu0 }
 0x3b0   :  { %v307_v29 = vpack.c.bf16 %v293_v28, %v292_v27  ;;  %v398_v27 = vpack.c.bf16 %v387_v26, %v386_v25  ;;  %v1441_v28 = vpop.permute.xlu1 %638 }
 0x3b2   :  { %961 = vmatmul.msk.bf16.gmra.mxu1 %vm139_vm12, %v307_v29  ;;  %967 = vmatmul.msk.bf16.gmra.mxu3 %vm139_vm12, %v307_v29  ;;  %v688_v29 = vld [vmem:[#allocation2] sm:$0x1] }
 0x3b8   :  { %v1452_v34 = vpop.permute.xlu1 %643 }
 0x3c2   :  { %985 = vmatmul.msk.bf16.vlgmr.msrb.gmra.mxu3 %vm178_vm13, %v1272_v32  ;;  %v560_v32 = vld [vmem:[%s1603_s12 + $0x50] sm:$0xff] }
 0x3c3   :  { %618 = vperm.xlu1 %999, %v560_v32   ;;  %v1450_v32 = vpop.permute.xlu2 %628 }
 0x3cb   :  { %608 = vperm.xlu1 %999, %v558_v35   ;;  %v388_v35 = vld [vmem:[%s1602_s11 + $0x50] sm:$0xff] }
 0x3d2   :  { %986 = vmatmul.msk.bf16.gmra.mxu3 %vm178_vm13, %v1276_v37  ;;  %v563_v37 = vld [vmem:[%s1603_s12 + $0x68] sm:$0xff]  ;;  %s907_s12 = sshll.u32 %s1612_s21, 4  ;;  %s908_s12 = int_to_ptr.hbm [resolvable:$true] %s907_s12 }
 0x3d3   :  { %633 = vperm.xlu2 %1000, %v563_v37   ;;  %603 = vperm.xlu1 %999, %v557_v38  }
 0x3db   :  { %623 = vperm.xlu2 %1000, %v561_v41   ;;  %593 = vperm.xlu1 %999, %v555_v42   ;;  %v365_v41 = vld [vmem:[%s1601_s10 + $0x68] sm:$0xff] }
 0x3e3   :  { %613 = vperm.xlu2 %1000, %v559_v45   ;;  %583 = vperm.xlu1 %999, %v553_v46  }
 0x3eb   :  { %588 = vperm.xlu2 %1000, %v554_v50   ;;  %573 = vperm.xlu1 %999, %v551_v51  }
 0x3f3   :  { %578 = vperm.xlu2 %1000, %v552_v61   ;;  %691 = vperm.xlu1 %999, %v688_v29  }
 0x3fb   :  { %568 = vperm.xlu2 %1000, %v550_v63  }
 0x41f   :  { %v323_v36 = vpop.f32.mrf.mxu1 }
 0x425   :  { %v342_v39 = vpop.f32.mrf.mxu3 }
 0x427   :  { %v325_v40 = vpop.f32.mrf.mxu1 }
 0x428   :  { %v376_v54 = vpack.c.bf16 %v325_v40, %v323_v36  ;;  %v389_v36 = vld [vmem:[%s1602_s11 + $0x58] sm:$0xff]  ;;  %v364_v40 = vld [vmem:[%s1601_s10 + $0x60] sm:$0xff] }
 0x429   :  { %v399_v37 = vpack.c.bf16 %v389_v36, %v388_v35  ;;  %v374_v42 = vpack.c.bf16 %v365_v41, %v364_v40 }
 0x42d   :  { %v344_v43 = vpop.f32.mrf.mxu3  ;;  %v1462_v38 = vpop.permute.xlu2 %633 }
 0x42e   :  { %v402_v60 = vpack.c.bf16 %v344_v43, %v342_v39  ;;  %v390_v43 = vld [vmem:[%s1602_s11 + $0x60] sm:$0xff] }
 0x42f   :  { %v328_v44 = vpop.f32.mrf.mxu1 }
 0x435   :  { %v347_v47 = vpop.f32.mrf.mxu3  ;;  %v1464_v39 = vpop.permute.xlu1 %618 }
 0x436   :  { %v1479_v45 = vpop.permute.xlu2 %623 }
 0x437   :  { %v330_v48 = vpop.f32.mrf.mxu1 }
 0x438   :  { %v377_v49 = vpack.c.bf16 %v330_v48, %v328_v44  ;;  %v391_v44 = vld [vmem:[%s1602_s11 + $0x68] sm:$0xff]  ;;  %v366_v48 = vld [vmem:[%s1601_s10 + $0x70] sm:$0xff] }
 0x439   :  { %v400_v46 = vpack.c.bf16 %v391_v44, %v390_v43 }
 0x43a   :  { %507 = vmatpush.bf16.msrb.mxu2 %v377_v49  ;;  %v367_v49 = vld [vmem:[%s1601_s10 + $0x78] sm:$0xff] }
 0x43b   :  { %v375_v51 = vpack.c.bf16 %v367_v49, %v366_v48 }
 0x43d   :  { %v349_v55 = vpop.f32.mrf.mxu3 }
 0x43e   :  { %v403_v57 = vpack.c.bf16 %v349_v55, %v347_v47  ;;  %508 = vmatpush.bf16.msrb.mxu2 %v376_v54  ;;  %v1481_v47 = vpop.permute.xlu1 %608  ;;  %v1490_v50 = vpop.permute.xlu2 %613  ;;  %v393_v54 = vld [vmem:[%s1602_s11 + $0x78] sm:$0xff] }
 0x43f   :  { %v401_v55 = vpack.c.bf16 %v393_v54, %v392_v53 }
 0x440   :  { %434 = vmatpush.bf16.msrb.mxu0 %v403_v57 }
 0x441   :  { %976 = vmatmul.msk.bf16.vlgmr.msrb.gmra.mxu2 %vm139_vm12, %v368_v56 }
 0x444   :  { %435 = vmatpush.bf16.msrb.mxu0 %v402_v60 }
 0x446   :  { %v604_v52 = vpop.permute.xlu1 %603  ;;  %v589_v56 = vpop.permute.xlu2 %588 }
 0x447   :  { %968 = vmatmul.msk.bf16.vlgmr.msrb.gmra.mxu0 %vm139_vm12, %v394_v62 }
 0x44e   :  { %v594_v57 = vpop.permute.xlu1 %593  ;;  %v579_v58 = vpop.permute.xlu2 %578 }
 0x451   :  { %977 = vmatmul.msk.bf16.gmra.mxu2 %vm139_vm12, %v369_v2 }
 0x456   :  { %v584_v59 = vpop.permute.xlu1 %583  ;;  %v569_v63 = vpop.permute.xlu2 %568 }
 0x457   :  { %969 = vmatmul.msk.bf16.gmra.mxu0 %vm139_vm12, %v395_v6 }
 0x45e   :  { %v574_v0 = vpop.permute.xlu1 %573 }
 0x461   :  { %978 = vmatmul.msk.bf16.gmra.mxu2 %vm139_vm12, %v370_v9 }
 0x467   :  { %970 = vmatmul.msk.bf16.gmra.mxu0 %vm139_vm12, %v396_v13 }
 0x471   :  { %979 = vmatmul.msk.bf16.gmra.mxu2 %vm139_vm12, %v371_v16 }
 0x477   :  { %971 = vmatmul.msk.bf16.gmra.mxu0 %vm139_vm12, %v397_v19 }
 0x481   :  { %980 = vmatmul.msk.bf16.gmra.mxu2 %vm139_vm12, %v372_v23 }
 0x487   :  { %972 = vmatmul.msk.bf16.gmra.mxu0 %vm139_vm12, %v398_v27 }
 0x491   :  { %981 = vmatmul.msk.bf16.gmra.mxu2 %vm139_vm12, %v373_v33 }
 0x497   :  { %973 = vmatmul.msk.bf16.gmra.mxu0 %vm139_vm12, %v399_v37 }
 0x4a1   :  { %982 = vmatmul.msk.bf16.gmra.mxu2 %vm139_vm12, %v374_v42  ;;  %v599_v42 = vpop.permute.xlu0 %598 }
 0x4a7   :  { %974 = vmatmul.msk.bf16.gmra.mxu0 %vm139_vm12, %v400_v46 }
 0x4b1   :  { %983 = vmatmul.msk.bf16.gmra.mxu2 %vm139_vm12, %v375_v51 }
 0x4b7   :  { %975 = vmatmul.msk.bf16.gmra.mxu0 %vm139_vm12, %v401_v55 }
 0x4c4   :  { %v437_v60 = vpop.f32.mrf.mxu0  ;;  %v510_v61 = vpop.f32.mrf.mxu2 }
 0x4c5   :  { %v511_v62 = vadd.f32 %v510_v61, %v437_v60 }
 0x4c7   :  { %v646_v4 = vadd.f32 %v569_v63, %v511_v62 }
 0x4c9   :  { %v662_v7 = vmax.f32 %v646_v4, 0.0 }
 0x4cc   :  { %v439_v1 = vpop.f32.mrf.mxu0  ;;  %v512_v2 = vpop.f32.mrf.mxu2 }
 0x4cd   :  { %v513_v5 = vadd.f32 %v512_v2, %v439_v1 }
 0x4cf   :  { %v647_v6 = vadd.f32 %v574_v0, %v513_v5 }
 0x4d1   :  { %v663_v8 = vmax.f32 %v647_v6, 0.0 }
 0x4d3   :  { %v1500_v9 = vpack.c.bf16 %v663_v8, %v662_v7  ;;  %v760_v7 = vpop.f32.mrf.mxu3 }
 0x4d4   :  { %v442_v10 = vpop.f32.mrf.mxu0  ;;  %v515_v11 = vpop.f32.mrf.mxu2 }
 0x4d5   :  { %v516_v12 = vadd.f32 %v515_v11, %v442_v10 }
 0x4d7   :  { %v648_v15 = vadd.f32 %v579_v58, %v516_v12 }
 0x4d9   :  { %v664_v18 = vmax.f32 %v648_v15, 0.0 }
 0x4dc   :  { %v444_v13 = vpop.f32.mrf.mxu0  ;;  %v517_v14 = vpop.f32.mrf.mxu2 }
 0x4dd   :  { %v518_v16 = vadd.f32 %v517_v14, %v444_v13 }
 0x4df   :  { %v649_v17 = vadd.f32 %v584_v59, %v518_v16 }
 0x4e1   :  { %v665_v19 = vmax.f32 %v649_v17, 0.0 }
 0x4e3   :  { %v1502_v20 = vpack.c.bf16 %v665_v19, %v664_v18  ;;  %v762_v18 = vpop.f32.mrf.mxu3 }
 0x4e4   :  { %v447_v22 = vpop.f32.mrf.mxu0  ;;  %v520_v23 = vpop.f32.mrf.mxu2 }
 0x4e5   :  { %v521_v25 = vadd.f32 %v520_v23, %v447_v22 }
 0x4e7   :  { %v650_v29 = vadd.f32 %v589_v56, %v521_v25 }
 0x4e9   :  { %v666_v33 = vmax.f32 %v650_v29, 0.0 }
 0x4ec   :  { %v449_v26 = vpop.f32.mrf.mxu0  ;;  %v522_v27 = vpop.f32.mrf.mxu2 }
 0x4ed   :  { %v523_v30 = vadd.f32 %v522_v27, %v449_v26 }
 0x4ef   :  { %v651_v31 = vadd.f32 %v594_v57, %v523_v30 }
 0x4f1   :  { %v667_v35 = vmax.f32 %v651_v31, 0.0 }
 0x4f3   :  { %v1504_v36 = vpack.c.bf16 %v667_v35, %v666_v33 }
 0x4f4   :  { %v452_v37 = vpop.f32.mrf.mxu0  ;;  %v525_v40 = vpop.f32.mrf.mxu2 }
 0x4f5   :  { %v526_v41 = vadd.f32 %v525_v40, %v452_v37 }
 0x4f7   :  { %v652_v46 = vadd.f32 %v599_v42, %v526_v41 }
 0x4f9   :  { %v668_v51 = vmax.f32 %v652_v46, 0.0 }
 0x4fc   :  { %v454_v43 = vpop.f32.mrf.mxu0  ;;  %v527_v44 = vpop.f32.mrf.mxu2 }
 0x4fd   :  { %v528_v48 = vadd.f32 %v527_v44, %v454_v43 }
 0x4ff   :  { %v653_v49 = vadd.f32 %v604_v52, %v528_v48  ;;  %v678_v48 = vld [vmem:[%s1604_s13] sm:$0x1]  ;;  %s1079_s13 = smov [#allocation5]  }
 0x501   :  { %v669_v53 = vmax.f32 %v653_v49, 0.0 }
 0x503   :  { %v683_v54 = vpack.c.bf16 %v669_v53, %v668_v51 }
 0x504   :  { %v457_v55 = vpop.f32.mrf.mxu0  ;;  %v530_v56 = vpop.f32.mrf.mxu2 }
 0x505   :  { %v531_v58 = vadd.f32 %v530_v56, %v457_v55 }
 0x50c   :  { %v459_v57 = vpop.f32.mrf.mxu0  ;;  %v532_v59 = vpop.f32.mrf.mxu2 }
 0x50d   :  { %v533_v26 = vadd.f32 %v532_v59, %v459_v57 }
 0x50f   :  { %v655_v33 = vadd.f32 %v1490_v50, %v533_v26 }
 0x511   :  { %v671_v40 = vmax.f32 %v655_v33, 0.0 }
 0x514   :  { %v462_v60 = vpop.f32.mrf.mxu0  ;;  %v535_v61 = vpop.f32.mrf.mxu2 }
 0x515   :  { %v536_v19 = vadd.f32 %v535_v61, %v462_v60 }
 0x517   :  { %v656_v31 = vadd.f32 %v1464_v39, %v536_v19  ;;  %v1006_v39 = vld [vmem:[%s1607_s16] ss:$0 sm:$0xff]  ;;  %s916_s16 = sshll.u32 %s1079_s13, 4  ;;  %s917_s16 = int_to_ptr.vmem [resolvable:$true] %s916_s16 }
 0x518   :  { %v763_v44 = vadd.f32 %v1006_v39, %v762_v18  ;;  %v761_v49 = vadd.f32 %v1006_v39, %v760_v7  ;;  %v692_v7 = vpop.permute.xlu1 %691 }
 0x519   :  { %v672_v37 = vmax.f32 %v656_v31, 0.0 }
 0x51a   :  { %v771_v53 = vmax.f32 %v763_v44, 0.0  ;;  %v770_v55 = vmax.f32 %v761_v49, 0.0  ;;  %v1008_v44 = vld [vmem:[%s1637_s5] ss:$0 sm:$0xff] }
 0x51b   :  { %vm842_vm2 = vcmp.eq.s32.totalorder %v1202_v3, %v1008_v44 }
 0x51c   :  { %v464_v62 = vpop.f32.mrf.mxu0  ;;  %v537_v63 = vpop.f32.mrf.mxu2  ;;  %v774_v56 = vpack.c.bf16 %v771_v53, %v770_v55 }
 0x51d   :  { %v538_v15 = vadd.f32 %v537_v63, %v464_v62 }
 0x51f   :  { %v657_v27 = vadd.f32 %v1479_v45, %v538_v15 }
 0x524   :  { %v467_v0 = vpop.f32.mrf.mxu0  ;;  %v540_v1 = vpop.f32.mrf.mxu2 }
 0x525   :  { %v541_v12 = vadd.f32 %v540_v1, %v467_v0  ;;  %v801_v0 = vld [vmem:[%s1608_s17] sm:$0xff]  ;;  %v802_v1 = vld [vmem:[%s1608_s17 + $0x8] sm:$0xff] }
 0x527   :  { %v658_v22 = vadd.f32 %v1450_v32, %v541_v12  ;;  %v765_v32 = vpop.f32.mrf.mxu3 }
 0x52c   :  { %v469_v2 = vpop.f32.mrf.mxu0  ;;  %v542_v4 = vpop.f32.mrf.mxu2 }
 0x52d   :  { %v543_v8 = vadd.f32 %v542_v4, %v469_v2  ;;  %v805_v4 = vpack.c.bf16 %v802_v1, %v801_v0 }
 0x52f   :  { %v659_v16 = vadd.f32 %v1462_v38, %v543_v8  ;;  %v673_v38 = vmax.f32 %v657_v27, 0.0  ;;  %v767_v43 = vpop.f32.mrf.mxu3  ;;  %v694_v8 = vperm.slane %v692_v7, 0 }
 0x530   :  { %v1517_v50 = vadd.f32 %v1006_v39, %v767_v43 }
 0x531   :  { %v675_v29 = vmax.f32 %v659_v16, 0.0  ;;  %v685_v41 = vpack.c.bf16 %v673_v38, %v672_v37 }
 0x532   :  { %v773_v46 = vmax.f32 %v1517_v50, 0.0  ;;  %v1007_v50 = vld [vmem:[%s1609_s18] ss:$0 sm:$0xff] }
 0x534   :  { %v472_v5 = vpop.f32.mrf.mxu0  ;;  %v545_v6 = vpop.f32.mrf.mxu2 }
 0x535   :  { %v546_v52 = vadd.f32 %v545_v6, %v472_v5 }
 0x537   :  { %v660_v13 = vadd.f32 %v1441_v28, %v546_v52  ;;  %v674_v28 = vmax.f32 %v658_v22, 0.0 }
 0x539   :  { %v676_v23 = vmax.f32 %v660_v13, 0.0  ;;  %v686_v35 = vpack.c.bf16 %v675_v29, %v674_v28 }
 0x53c   :  { %v474_v10 = vpop.f32.mrf.mxu0  ;;  %v547_v11 = vpop.f32.mrf.mxu2 }
 0x53d   :  { %v548_v14 = vadd.f32 %v547_v11, %v474_v10 }
 0x53f   :  { %v661_v17 = vadd.f32 %v1452_v34, %v548_v14  ;;  %v654_v34 = vadd.f32 %v1481_v47, %v531_v58  ;;  %v1520_v47 = vadd.f32 %v1006_v39, %v765_v32  ;;  %v715_v58 = vld [vmem:[%s1636_s29] sm:$0x1] }
 0x541   :  { %v677_v25 = vmax.f32 %v661_v17, 0.0  ;;  %v670_v42 = vmax.f32 %v654_v34, 0.0  ;;  %v772_v51 = vmax.f32 %v1520_v47, 0.0 }
 0x543   :  { %v687_v30 = vpack.c.bf16 %v677_v25, %v676_v23  ;;  %v684_v45 = vpack.c.bf16 %v671_v40, %v670_v42 }
 0x545   :  { %695 = vmatpush.bf16.msra.mxu1 %v687_v30 }
 0x549   :  { %696 = vmatpush.bf16.msra.mxu1 %v686_v35 }
 0x54d   :  { %697 = vmatpush.bf16.msra.mxu1 %v685_v41 }
 0x551   :  { %698 = vmatpush.bf16.msra.mxu1 %v684_v45 }
 0x555   :  { %699 = vmatpush.bf16.msra.mxu1 %v683_v54  ;;  %v679_v54 = vpack.c.bf16 %v678_v48, %v678_v48  ;;  %v1078_v48 = vmov 0.0  }
 0x556   :  { %v991_v49 = vsel %vm842_vm2, 1.0, %v1078_v48 }
 0x559   :  { %700 = vmatpush.bf16.msra.mxu1 %v1504_v36  ;;  %v775_v36 = vpack.c.bf16 %v773_v46, %v772_v51 }
 0x55d   :  { %701 = vmatpush.bf16.msra.mxu1 %v1502_v20  ;;  %v708_v20 = vld [vmem:[%s1635_s8] sm:$0x1] }
 0x55e   :  { %1010 = vlog2.f32 %v708_v20 }
 0x55f   :  { %1012 = vlog2.f32 %v715_v58 }
 0x561   :  { %702 = vmatpush.bf16.msra.mxu1 %v1500_v9 }
 0x564   :  { %703 = vmatmul.bf16.vlgmr.msra.gmra.mxu1 %v679_v54  ;;  %v1011_v9 = vpop.eup %1010 }
 0x565   :  { %782 = vmatpush.bf16.msrb.mxu1 %v775_v36  ;;  %v1013_v57 = vpop.eup %1012  ;;  %v710_v59 = vmul.f32 0.6931472, %v1011_v9 }
 0x566   :  { %v717_v60 = vmul.f32 0.6931472, %v1013_v57 }
 0x567   :  { %v711_v61 = vsub.f32 0.0, %v710_v59 }
 0x568   :  { %v718_v62 = vsub.f32 0.0, %v717_v60  ;;  %v851_v60 = vpack.c.bf16 %v991_v49, %v991_v49 }
 0x569   :  { %783 = vmatpush.bf16.msrb.mxu1 %v774_v56  ;;  %1014 = vlog2.f32 %v711_v61  ;;  %v874_v61 = vld [vmem:[%s1610_s19 + $0x10] sm:$0xff] }
 0x56a   :  { %1016 = vlog2.f32 %v718_v62  ;;  %v875_v62 = vld [vmem:[%s1610_s19 + $0x18] sm:$0xff] }
 0x56f   :  { %v1015_v2 = vpop.eup %1014 }
 0x570   :  { %v1017_v5 = vpop.eup %1016  ;;  %v713_v6 = vmul.f32 0.6931472, %v1015_v2 }
 0x571   :  { %v720_v52 = vmul.f32 0.6931472, %v1017_v5 }
 0x572   :  { %v714_v10 = vsub.f32 0.0, %v713_v6 }
 0x573   :  { %v721_v13 = vsub.f32 0.0, %v720_v52 }
 0x574   :  { %987 = vmatmul.msk.bf16.vlgmr.msrb.gmra.mxu1 %vm139_vm12, %v1258_v21  ;;  %v803_v21 = vld [vmem:[%s1608_s17 + $0x10] sm:$0xff] }
 0x584   :  { %988 = vmatmul.msk.bf16.gmra.mxu1 %vm139_vm12, %v1262_v24  ;;  %v804_v24 = vld [vmem:[%s1608_s17 + $0x18] sm:$0xff] }
 0x585   :  { %v806_v63 = vpack.c.bf16 %v804_v24, %v803_v21  ;;  %v877_v21 = vpack.c.bf16 %v875_v62, %v874_v61  ;;  %v872_v24 = vld [vmem:[%s1610_s19] sm:$0xff] }
 0x587   :  { %823 = vmatpush.bf16.msra.mxu3 %v806_v63  ;;  %v873_v63 = vld [vmem:[%s1610_s19 + $0x8] sm:$0xff] }
 0x588   :  { %v876_v0 = vpack.c.bf16 %v873_v63, %v872_v24 }
 0x58b   :  { %824 = vmatpush.bf16.msra.mxu3 %v805_v4 }
 0x5e1   :  { %v704_v11 = vpop.f32.mrf.mxu1 }
 0x5e2   :  { %v705_v12 = vadd.f32 %v704_v11, %v694_v8  ;;  %v1009_v8 = vld [vmem:[%s1611_s20] ss:$0 sm:$0xff] }
 0x5e4   :  { %v722_v14 = vadd.f32 %v714_v10, %v705_v12 }
 0x5e6   :  { %v723_v15 = vsub.f32 %v722_v14, %v721_v13 }
 0x5e8   :  { %v984_v16 = vmul.f32 -1.442695, %v723_v15 }
 0x5e9   :  { %v706_v17 = vpop.f32.mrf.mxu1 }
 0x5ea   :  { %1018 = vpow2.f32 %v984_v16 }
 0x5f0   :  { %v1019_v18 = vpop.eup %1018 }
 0x5f1   :  { %v727_v19 = vadd.f32 1.0, %v1019_v18  ;;  %v785_v22 = vpop.f32.mrf.mxu1 }
 0x5f2   :  { %v795_v26 = vadd.f32 %v785_v22, %v770_v55 }
 0x5f3   :  { %1020 = vrcp.f32 %v727_v19  ;;  %v739_v28 = vand.u32 2147483648, %v727_v19  ;;  %v737_v38 = vand.u32 2147483647, %v727_v19  ;;  %vm733_vm15 = vweird.f32 %v727_v19 }
 0x5f5   :  { %v740_v37 = vor.u32 1.1754944e-38, %v739_v28  ;;  %vm738_vm1 = vcmp.eq.f32.partialorder %v737_v38, 8.507059e+37 }
 0x5f9   :  { %v1021_v23 = vpop.eup %1020  ;;  %v787_v25 = vpop.f32.mrf.mxu1 }
 0x5fa   :  { %v796_v27 = vadd.f32 %v787_v25, %v771_v53  ;;  %v729_v29 = vmul.f32 %v1021_v23, %v727_v19  ;;  %vm734_vm14 = vweird.f32 %v1021_v23  ;;  %v846_v53 = vsel %vm845_vm3, %v991_v49, 0.0 }
 0x5fb   :  { %vm735_vm0 = vmor %vm733_vm15, %vm734_vm14  ;;  %847 = vadd.xlane.f32.xlu2 %v846_v53 }
 0x5fc   :  { %v799_v30 = vpack.c.bf16 %v796_v27, %v795_v26  ;;  %v730_v31 = vsub.f32 1.0, %v729_v29 }
 0x5fe   :  { %989 = vmatmul.msk.bf16.vlgmr.msra.gmra.mxu3 %vm139_vm12, %v799_v30  ;;  %v731_v33 = vmul.f32 %v1021_v23, %v730_v31 }
 0x600   :  { %v732_v35 = vadd.f32 %v1021_v23, %v731_v33 }
 0x601   :  { %v790_v34 = vpop.f32.mrf.mxu1 }
 0x602   :  { %v736_v32 = vsel %vm735_vm0, %v1021_v23, %v732_v35  ;;  %v797_v42 = vadd.f32 %v790_v34, %v772_v51 }
 0x603   :  { %v741_v40 = vsel %vm738_vm1, %v740_v37, %v736_v32 }
 0x604   :  { %743 = vst [vmem:[#allocation5] sm:$0x1] %v741_v40 }
 0x605   :  { %921 = dma.vmem_to_hbm [thread:$0]  %s917_s16, 16, %s919_s9, [#allocation6]  }
 0x609   :  { %v792_v41 = vpop.f32.mrf.mxu1 }
 0x60a   :  { %v798_v45 = vadd.f32 %v792_v41, %v773_v46 }
 0x60c   :  { %v800_v43 = vpack.c.bf16 %v798_v45, %v797_v42 }
 0x60e   :  { %990 = vmatmul.msk.bf16.gmra.mxu3 %vm139_vm12, %v800_v43 }
 0x66e   :  { %v848_v1 = vpop.xlane.xlu2 %847 }
 0x66f   :  { %v849_v2 = vmax.f32 %v848_v1, 1.0 }
 0x671   :  { %1022 = vrcp.f32 %v849_v2 }
 0x677   :  { %v1023_v4 = vpop.eup %1022 }
 0x681   :  { %v826_v39 = vpop.f32.mrf.mxu3 }
 0x682   :  { %v827_v56 = vadd.f32 %v1007_v50, %v826_v39 }
 0x684   :  { %v836_v57 = vmax.f32 %v827_v56, 0.0 }
 0x689   :  { %v828_v47 = vpop.f32.mrf.mxu3 }
 0x68a   :  { %v829_v54 = vadd.f32 %v1007_v50, %v828_v47 }
 0x68c   :  { %v837_v9 = vmax.f32 %v829_v54, 0.0 }
 0x68e   :  { %v852_v59 = vpack.c.bf16 %v837_v9, %v836_v57 }
 0x691   :  { %v831_v51 = vpop.f32.mrf.mxu3 }
 0x692   :  { %v832_v46 = vadd.f32 %v1007_v50, %v831_v51 }
 0x694   :  { %v838_v20 = vmax.f32 %v832_v46, 0.0 }
 0x699   :  { %v833_v36 = vpop.f32.mrf.mxu3 }
 0x69a   :  { %v834_v55 = vadd.f32 %v1007_v50, %v833_v36 }
 0x69c   :  { %v839_v58 = vmax.f32 %v834_v55, 0.0 }
 0x69e   :  { %v853_v3 = vpack.c.bf16 %v839_v58, %v838_v20 }
 0x6a0   :  { %863 = vmatpush.bf16.msra.mxu1 %v853_v3 }
 0x6a4   :  { %864 = vmatpush.bf16.msra.mxu1 %v852_v59 }
 0x6a7   :  { %992 = vmatmul.msk.bf16.vlgmr.msra.gmra.mxu1 %vm139_vm12, %v851_v60 }
 0x6a8   :  { %891 = vmatpush.bf16.msrb.mxu1 %v877_v21 }
 0x6ac   :  { %892 = vmatpush.bf16.msrb.mxu1 %v876_v0 }
 0x724   :  { %v866_v5 = vpop.f32.mrf.mxu1 }
 0x725   :  { %v870_v6 = vmul.f32 %v1023_v4, %v866_v5 }
 0x727   :  { %v871_v7 = vpack.c.bf16 %v870_v6, %v870_v6 }
 0x729   :  { %993 = vmatmul.msk.bf16.vlgmr.msrb.gmra.mxu1 %vm139_vm12, %v871_v7 }
 0x72c   :  { %v868_v52 = vpop.f32.mrf.mxu1 }
 0x7a6   :  { %v894_v10 = vpop.f32.mrf.mxu1 }
 0x7a7   :  { %v895_v11 = vadd.f32 %v1009_v8, %v894_v10 }
 0x7a9   :  { %899 = vst.msk [vmem:[#allocation3] sm:$0x3] %vm898_vm4, %v895_v11 }
 0x7aa   :  { %910 = dma.vmem_to_hbm [thread:$0]  %s906_s30, 32, %s908_s12, [#allocation4]  }
 0x7ae   :  { %v896_v12 = vpop.f32.mrf.mxu1 }
 0x7af   :  { %1072 = dma.done.wait [#allocation4], 32  }
 0x7b0   :  { %1073 = vsyncadd [#allocation4], 4294967264 }
 0x7b1   :  { %1074 = dma.done.wait [#allocation6], 16  }
 0x7b2   :  { %1075 = vsyncadd [#allocation6], 4294967280 }
 0x7b3   :  { %930 = vsyncpa [#allocation4], 1 }
 0x7b4   :  { %931 = vsyncpa [#allocation6], 1 }

</bundles_post_ra>
